<compile_context>
chip_gen: v6e
topology: v6e:2x2x1
jax: 0.10.0
libtpu: 0.0.40
codegen_flags: <defaults>
</compile_context>

<pallas_src>
import jax
import jax.numpy as jnp
from jax.experimental import pallas as pl
from jax.experimental.pallas import tpu as pltpu


# ----------------------------- Pallas kernel ------------------------------ #
def hme_head_kernel(
    app_ref,    # (bt, F, 2d)  appearance features (native dtype, f32 ok)
    mot_ref,    # (bt, F, 2d)  motion features
    qns_ref,    # (bt, 2d)     question embedding
    mem_ref,    # (bt, 2d)     heterogeneous-memory output
    w_t_ref,    # (2d, 2H)     [wt_a | wt_m]                      (compute dtype)
    w_va_ref,   # (2d, H)      TempAttention-app V projection
    w_vm_ref,   # (2d, H)      TempAttention-motion V projection
    attb_ref,   # (2, 2H)      row0: [bt_a+bv_a | bt_m+bv_m], row1: [wa_a^T | wa_m^T]  (f32)
    w_vid_ref,  # (2d, d)      linear_vid weight
    w_mem_ref,  # (2d, d)      linear_mem weight
    b_vm_ref,   # (2, d)       row0: bvid, row1: bmem             (f32)
    w_vq_ref,   # (3d, 2d)     vq2word_hme weight
    b_vq_ref,   # (1, 2d)      vq2word_hme bias                   (f32)
    out_ref,    # (bt, OUT_W)  [dec(2d) | beta_app(F) | beta_mot(F) | zero pad]
):
    bt, F, D2 = app_ref.shape
    H = w_va_ref.shape[1]
    D = w_vid_ref.shape[1]
    cdt = w_t_ref.dtype                       # MXU operand dtype (f32 or bf16)
    f32 = jnp.float32

    app = app_ref[...].astype(f32)            # (bt, F, 2d) — VPU math stays f32
    mot = mot_ref[...].astype(f32)
    qns = qns_ref[...]
    mem = mem_ref[...]

    attb = attb_ref[...]
    b_tv = attb[0:1, :]                       # (1, 2H) combined T+V bias
    wa = attb[1:2, :]                         # (1, 2H) attention vectors

    # ---- TempAttention, both branches ----
    # T projection: one stacked matmul for both branches (N = 2H, lane aligned).
    tb = jnp.dot(qns.astype(cdt), w_t_ref[...],
                 preferred_element_type=f32) + b_tv                          # (bt, 2H)
    # V projections: one matmul per branch (no zero block-diag), N = H.
    v_a = jnp.dot(app.astype(cdt).reshape(bt * F, D2), w_va_ref[...],
                  preferred_element_type=f32).reshape(bt, F, H)
    v_m = jnp.dot(mot.astype(cdt).reshape(bt * F, D2), w_vm_ref[...],
                  preferred_element_type=f32).reshape(bt, F, H)

    h_a = jnp.tanh(tb[:, None, :H] + v_a)                                    # (bt, F, H)
    h_m = jnp.tanh(tb[:, None, H:] + v_m)

    # attention logits: VPU multiply + lane (XLU) reduce instead of an N=1 matmul
    e_a = jnp.sum(h_a * wa[:, :H], axis=-1)                                  # (bt, F)
    e_m = jnp.sum(h_m * wa[:, H:], axis=-1)

    def softmax_last(e):
        e = e - jnp.max(e, axis=-1, keepdims=True)
        w = jnp.exp(e)
        return w * pl.reciprocal(jnp.sum(w, axis=-1, keepdims=True), approx=True)

    beta_a = softmax_last(e_a)                                               # (bt, F)
    beta_m = softmax_last(e_m)

    att_app = jnp.sum(beta_a[:, :, None] * app, axis=1)                      # (bt, 2d) f32
    att_mot = jnp.sum(beta_m[:, :, None] * mot, axis=1)

    # ---- linear_vid (x2) / linear_mem: kept separate (no lane concats) ----
    b_vid = b_vm_ref[0:1, :]
    b_mem = b_vm_ref[1:2, :]
    enc_a = jnp.tanh(jnp.dot(att_app.astype(cdt), w_vid_ref[...],
                             preferred_element_type=f32) + b_vid)            # (bt, d)
    enc_m = jnp.tanh(jnp.dot(att_mot.astype(cdt), w_vid_ref[...],
                             preferred_element_type=f32) + b_vid)
    enc_q = jnp.tanh(jnp.dot(mem.astype(cdt), w_mem_ref[...],
                             preferred_element_type=f32) + b_mem)

    # ---- vq2word_hme: w_vq split along K into its three d-row blocks ----
    dec = (jnp.dot(enc_a.astype(cdt), w_vq_ref[0:D, :], preferred_element_type=f32)
           + jnp.dot(enc_m.astype(cdt), w_vq_ref[D:2 * D, :], preferred_element_type=f32)
           + jnp.dot(enc_q.astype(cdt), w_vq_ref[2 * D:3 * D, :], preferred_element_type=f32)
           + b_vq_ref[...])                                                  # (bt, 2d)

    # ---- one lane-dense store: [dec | beta_app | beta_mot | pad] ----
    pieces = [dec, beta_a, beta_m]
    pad = out_ref.shape[1] - (D2 + 2 * F)
    if pad > 0:
        pieces.append(jnp.zeros((bt, pad), f32))
    out_ref[...] = jnp.concatenate(pieces, axis=1).astype(out_ref.dtype)


# --------------------------- one-time weight packing ----------------------- #
def pack_hme_params(p, compute_dtype=jnp.bfloat16):
    """Pack the 18 HME-head parameters into 9 kernel slabs.

    Call ONCE and reuse the result across forward calls — the concats / bias
    folding / casts here are traced XLA ops and must stay off the per-call path.
    bf16 operands are safe on v5e/v6e/v7x (all elementwise math and matmul
    accumulation in the kernel stay f32); pass jnp.float32 for exact matmuls.
    """
    cdt, f32 = compute_dtype, jnp.float32
    return {
        "w_t":  jnp.concatenate([p["wt_a"], p["wt_m"]], axis=1).astype(cdt),   # (2d, 2H)
        "w_va": p["wv_a"].astype(cdt),                                         # (2d, H)
        "w_vm": p["wv_m"].astype(cdt),                                         # (2d, H)
        "attb": jnp.concatenate([
            jnp.concatenate([p["bt_a"] + p["bv_a"], p["bt_m"] + p["bv_m"]], axis=1),
            jnp.concatenate([p["wa_a"].T, p["wa_m"].T], axis=1),
        ], axis=0).astype(f32),                                                # (2, 2H)
        "w_vid": p["wvid"].astype(cdt),                                        # (2d, d)
        "w_mem": p["wmem"].astype(cdt),                                        # (2d, d)
        "b_vm": jnp.concatenate([p["bvid"], p["bmem"]], axis=0).astype(f32),   # (2, d)
        "w_vq": p["wvq"].astype(cdt),                                          # (3d, 2d)
        "b_vq": p["bvq"].astype(f32),                                          # (1, 2d)
    }


# ------------------------------ wrapper ----------------------------------- #
def _choose_bt(B, F, H):
    """Rows per grid step: bound the (bt, F, H) f32 temporaries to a few MiB of
    VMEM, and for B > 16 force >= 2 grid steps so ("parallel",) semantics can
    shard the batch across both v7x TensorCores."""
    per_row = 6 * F * H * 4                     # ~6 live (F, H) f32 temps per batch row
    cap = max(8, (6 * 1024 * 1024) // max(1, per_row))
    bt = min(B, 128, cap)
    if B > 16 and bt >= B:
        bt = (B + 1) // 2
    if bt < B:
        bt = max(16, (bt // 16) * 16)           # sublane-aligned tiles (f32 & bf16 safe)
    return bt


def hme_head(outputs_app, outputs_motion, qns_embed, mem_output, packed):
    """HME head forward.

    outputs_app / outputs_motion: (B, F, 2*dim); qns_embed / mem_output: (B, 2*dim).
    `packed` comes from pack_hme_params (built once, reused).  Inputs are passed
    to the kernel in their native dtype — no host-side concat/cast HBM passes;
    MXU operands are cast to the packed-weight dtype inside the kernel.

    Returns (decoder_inputs (B, 2*dim), beta_app (B, F), beta_motion (B, F)).
    """
    B, F, D2 = outputs_app.shape
    H = packed["w_va"].shape[1]
    OUT_W = ((D2 + 2 * F + 127) // 128) * 128

    bt = _choose_bt(B, F, H)
    grid = (pl.cdiv(B, bt),)

    data3 = lambda i: (i, 0, 0)
    data2 = lambda i: (i, 0)
    wmap = lambda i: (0, 0)

    # Weight slabs total ~100-200 KiB, so default double-buffering of their
    # constant-index blocks is a negligible VMEM cost.
    weight_keys = ("w_t", "w_va", "w_vm", "attb", "w_vid", "w_mem", "b_vm", "w_vq", "b_vq")
    in_specs = [
        pl.BlockSpec((bt, F, D2), data3),
        pl.BlockSpec((bt, F, D2), data3),
        pl.BlockSpec((bt, D2), data2),
        pl.BlockSpec((bt, D2), data2),
    ] + [pl.BlockSpec(packed[k].shape, wmap) for k in weight_keys]

    out = pl.pallas_call(
        hme_head_kernel,
        out_shape=jax.ShapeDtypeStruct((B, OUT_W), jnp.float32),
        grid=grid,
        in_specs=in_specs,
        out_specs=pl.BlockSpec((bt, OUT_W), data2),
        compiler_params=pltpu.CompilerParams(dimension_semantics=("parallel",)),
    )(outputs_app, outputs_motion, qns_embed, mem_output,
      *(packed[k] for k in weight_keys))

    dec = out[:, :D2]
    beta_app = out[:, D2:D2 + F]
    beta_mot = out[:, D2 + F:D2 + 2 * F]
    return dec, beta_app, beta_mot


# --------------------------- parameter setup ------------------------------ #
def xavier(key, fan_in, fan_out):
    std = (2.0 / (fan_in + fan_out)) ** 0.5
    return std * jax.random.normal(key, (fan_in, fan_out), dtype=jnp.float32)


def small_bias(key, n):
    return 0.1 * jax.random.normal(key, (1, n), dtype=jnp.float32)


def make_params(key, dim, hidden):
    D, D2, D3, H = dim, 2 * dim, 3 * dim, hidden
    ks = jax.random.split(key, 20)
    return {
        # TempAttention appearance
        "wt_a": xavier(ks[0], D2, H), "bt_a": small_bias(ks[10], H),
        "wv_a": xavier(ks[1], D2, H), "bv_a": small_bias(ks[11], H),
        "wa_a": xavier(ks[2], H, 1),
        # TempAttention motion
        "wt_m": xavier(ks[3], D2, H), "bt_m": small_bias(ks[12], H),
        "wv_m": xavier(ks[4], D2, H), "bv_m": small_bias(ks[13], H),
        "wa_m": xavier(ks[5], H, 1),
        # linear_vid / linear_mem (linear_qns is unused in forward, omitted)
        "wvid": xavier(ks[6], D2, D), "bvid": small_bias(ks[14], D),
        "wmem": xavier(ks[7], D2, D), "bmem": small_bias(ks[15], D),
        # vq2word_hme
        "wvq": xavier(ks[8], D3, D2), "bvq": small_bias(ks[16], D2),
    }


# --------------------------- pure-JAX reference ---------------------------- #
def reference(outputs_app, outputs_motion, qns_embed, mem_output, p):
    def temp_att(vis, wt, bt, wv, bv, wa):
        t = qns_embed @ wt + bt                                   # (B, H)
        v = jnp.einsum("bfd,dh->bfh", vis, wv) + bv               # (B, F, H)
        e = jnp.einsum("bfh,ho->bf", jnp.tanh(t[:, None, :] + v), wa)
        beta = jax.nn.softmax(e, axis=1)
        att = jnp.einsum("bf,bfd->bd", beta, vis)
        return att, beta

    att_a, beta_a = temp_att(outputs_app, p["wt_a"], p["bt_a"], p["wv_a"], p["bv_a"], p["wa_a"])
    att_m, beta_m = temp_att(outputs_motion, p["wt_m"], p["bt_m"], p["wv_m"], p["bv_m"], p["wa_m"])
    app_t = jnp.tanh(att_a @ p["wvid"] + p["bvid"])
    mot_t = jnp.tanh(att_m @ p["wvid"] + p["bvid"])
    mem_t = jnp.tanh(mem_output @ p["wmem"] + p["bmem"])
    enc = jnp.concatenate([app_t, mot_t, mem_t], axis=1)
    dec = enc @ p["wvq"] + p["bvq"]
    return dec, beta_a, beta_m


# --------------------------------- main ------------------------------------ #
if __name__ == "__main__":
    B, F, D, H = 2, 8, 32, 256       # batch, frames, dim_hidden, attention hidden
    key = jax.random.PRNGKey(0)
    k_app1, k_app2, k_mot1, k_mot2, k_h, k_mem, k_p = jax.random.split(key, 7)

    # synthetic outputs of the external vid_encoder / qns_encoder
    outputs_app_l1 = jax.random.normal(k_app1, (B, F, D), dtype=jnp.float32)
    outputs_app_l2 = jax.random.normal(k_app2, (B, F, D), dtype=jnp.float32)
    outputs_motion_l1 = jax.random.normal(k_mot1, (B, F, D), dtype=jnp.float32)
    outputs_motion_l2 = jax.random.normal(k_mot2, (B, F, D), dtype=jnp.float32)
    qns_hidden_h = jax.random.normal(k_h, (2, B, D), dtype=jnp.float32)   # (layers, B, D)

    outputs_app = jnp.concatenate([outputs_app_l1, outputs_app_l2], axis=-1)      # (B, F, 2D)
    outputs_motion = jnp.concatenate([outputs_motion_l1, outputs_motion_l2], axis=-1)
    qns_embed = jnp.transpose(qns_hidden_h, (1, 0, 2)).reshape(B, -1)             # (B, 2D)

    # TODO(synk): MemoryRamTwoStreamModule / MemoryRamModule / MMModule and the
    # ans_decoder teacher-forcing loop are external submodules not defined in
    # HME.py; mem_output is synthesized here as their stand-in output.
    mem_output = jax.random.normal(k_mem, (B, 2 * D), dtype=jnp.float32)

    params = make_params(k_p, D, H)
    dec_ref, beta_a_ref, beta_m_ref = reference(outputs_app, outputs_motion,
                                                qns_embed, mem_output, params)

    # ---- f32 matmul operands: exact-path check (only approx-softmax error) ----
    packed_f32 = pack_hme_params(params, jnp.float32)          # packed once, reused
    dec, beta_a, beta_m = hme_head(outputs_app, outputs_motion, qns_embed,
                                   mem_output, packed_f32)
    jax.block_until_ready(dec)
    assert jnp.allclose(dec, dec_ref, atol=1e-2, rtol=1e-2)
    assert jnp.allclose(beta_a, beta_a_ref, atol=5e-3, rtol=5e-3)
    assert jnp.allclose(beta_m, beta_m_ref, atol=5e-3, rtol=5e-3)

    # ---- bf16 matmul operands (default fast path on v5e/v6e/v7x) ----
    packed_bf16 = pack_hme_params(params)                       # compute_dtype=bf16
    dec16, beta_a16, beta_m16 = hme_head(outputs_app, outputs_motion, qns_embed,
                                         mem_output, packed_bf16)
    jax.block_until_ready(dec16)
    assert jnp.allclose(dec16, dec_ref, atol=1e-1, rtol=1e-1)
    assert jnp.allclose(beta_a16, beta_a_ref, atol=5e-2, rtol=5e-2)
    assert jnp.allclose(beta_m16, beta_m_ref, atol=5e-2, rtol=5e-2)

    print("KERNEL_OK")
</pallas_src>

<mosaic_0001>
module attributes {stable_mosaic.version = 11 : i64} {
  func.func @hme_head_kernel(%arg0: i32, %arg1: memref<2x8x64xf32, #tpu.memory_space<vmem>>, %arg2: memref<2x8x64xf32, #tpu.memory_space<vmem>>, %arg3: memref<2x64xf32, #tpu.memory_space<vmem>>, %arg4: memref<2x64xf32, #tpu.memory_space<vmem>>, %arg5: memref<64x512xf32, #tpu.memory_space<vmem>>, %arg6: memref<64x256xf32, #tpu.memory_space<vmem>>, %arg7: memref<64x256xf32, #tpu.memory_space<vmem>>, %arg8: memref<2x512xf32, #tpu.memory_space<vmem>>, %arg9: memref<64x32xf32, #tpu.memory_space<vmem>>, %arg10: memref<64x32xf32, #tpu.memory_space<vmem>>, %arg11: memref<2x32xf32, #tpu.memory_space<vmem>>, %arg12: memref<96x64xf32, #tpu.memory_space<vmem>>, %arg13: memref<1x64xf32, #tpu.memory_space<vmem>>, %arg14: memref<2x128xf32, #tpu.memory_space<vmem>>) attributes {dimension_semantics = [#tpu.dimension_semantics<parallel>], iteration_bounds = array<i64: 1>, scalar_prefetch = 0 : i64, scratch_operands = 0 : i64, tpu.core_type = #tpu.core_type<tc>, window_params = [{transform_indices = @transform_0, window_bounds = array<i64: 2, 8, 64>}, {transform_indices = @transform_1, window_bounds = array<i64: 2, 8, 64>}, {transform_indices = @transform_2, window_bounds = array<i64: 2, 64>}, {transform_indices = @transform_3, window_bounds = array<i64: 2, 64>}, {pipeline_mode = #tpu.pipeline_mode<synchronous>, transform_indices = @transform_4, window_bounds = array<i64: 64, 512>}, {pipeline_mode = #tpu.pipeline_mode<synchronous>, transform_indices = @transform_5, window_bounds = array<i64: 64, 256>}, {pipeline_mode = #tpu.pipeline_mode<synchronous>, transform_indices = @transform_6, window_bounds = array<i64: 64, 256>}, {pipeline_mode = #tpu.pipeline_mode<synchronous>, transform_indices = @transform_7, window_bounds = array<i64: 2, 512>}, {pipeline_mode = #tpu.pipeline_mode<synchronous>, transform_indices = @transform_8, window_bounds = array<i64: 64, 32>}, {pipeline_mode = #tpu.pipeline_mode<synchronous>, transform_indices = @transform_9, window_bounds = array<i64: 64, 32>}, {pipeline_mode = #tpu.pipeline_mode<synchronous>, transform_indices = @transform_10, window_bounds = array<i64: 2, 32>}, {pipeline_mode = #tpu.pipeline_mode<synchronous>, transform_indices = @transform_11, window_bounds = array<i64: 96, 64>}, {pipeline_mode = #tpu.pipeline_mode<synchronous>, transform_indices = @transform_12, window_bounds = array<i64: 1, 64>}, {transform_indices = @transform_13, window_bounds = array<i64: 2, 128>}]} {
    %c0 = arith.constant 0 : index
    %c0_0 = arith.constant 0 : index
    %c0_1 = arith.constant 0 : index
    %0 = vector.load %arg1[%c0, %c0_0, %c0_1] : memref<2x8x64xf32, #tpu.memory_space<vmem>>, vector<2x8x64xf32>
    %c0_2 = arith.constant 0 : index
    %c0_3 = arith.constant 0 : index
    %c0_4 = arith.constant 0 : index
    %1 = vector.load %arg2[%c0_2, %c0_3, %c0_4] : memref<2x8x64xf32, #tpu.memory_space<vmem>>, vector<2x8x64xf32>
    %c0_5 = arith.constant 0 : index
    %c0_6 = arith.constant 0 : index
    %2 = vector.load %arg3[%c0_5, %c0_6] : memref<2x64xf32, #tpu.memory_space<vmem>>, vector<2x64xf32>
    %c0_7 = arith.constant 0 : index
    %c0_8 = arith.constant 0 : index
    %3 = vector.load %arg4[%c0_7, %c0_8] : memref<2x64xf32, #tpu.memory_space<vmem>>, vector<2x64xf32>
    %c0_9 = arith.constant 0 : index
    %c0_10 = arith.constant 0 : index
    %4 = vector.load %arg8[%c0_9, %c0_10] : memref<2x512xf32, #tpu.memory_space<vmem>>, vector<2x512xf32>
    %5 = vector.extract_strided_slice %4 {offsets = [0, 0], sizes = [1, 512], strides = [1, 1]} : vector<2x512xf32> to vector<1x512xf32>
    %6 = vector.extract_strided_slice %4 {offsets = [1, 0], sizes = [1, 512], strides = [1, 1]} : vector<2x512xf32> to vector<1x512xf32>
    %c0_11 = arith.constant 0 : index
    %c0_12 = arith.constant 0 : index
    %7 = vector.load %arg5[%c0_11, %c0_12] : memref<64x512xf32, #tpu.memory_space<vmem>>, vector<64x512xf32>
    %cst = arith.constant dense<0.000000e+00> : vector<2x512xf32>
    %8 = tpu.matmul %2, %7, %cst {dimension_numbers = #tpu.dot_dimension_numbers<[1], [0], [0], [1], [0, 0, 1, 1], [], []>} : vector<2x64xf32>, vector<64x512xf32>, vector<2x512xf32> -> vector<2x512xf32>
    %9 = vector.broadcast %5 : vector<1x512xf32> to vector<2x512xf32>
    %10 = arith.addf %8, %9 : vector<2x512xf32>
    %11 = vector.shape_cast %0 : vector<2x8x64xf32> to vector<16x64xf32>
    %c0_13 = arith.constant 0 : index
    %c0_14 = arith.constant 0 : index
    %12 = vector.load %arg6[%c0_13, %c0_14] : memref<64x256xf32, #tpu.memory_space<vmem>>, vector<64x256xf32>
    %cst_15 = arith.constant dense<0.000000e+00> : vector<16x256xf32>
    %13 = tpu.matmul %11, %12, %cst_15 {dimension_numbers = #tpu.dot_dimension_numbers<[1], [0], [0], [1], [0, 0, 1, 1], [], []>} : vector<16x64xf32>, vector<64x256xf32>, vector<16x256xf32> -> vector<16x256xf32>
    %14 = vector.shape_cast %13 : vector<16x256xf32> to vector<2x8x256xf32>
    %15 = vector.shape_cast %1 : vector<2x8x64xf32> to vector<16x64xf32>
    %c0_16 = arith.constant 0 : index
    %c0_17 = arith.constant 0 : index
    %16 = vector.load %arg7[%c0_16, %c0_17] : memref<64x256xf32, #tpu.memory_space<vmem>>, vector<64x256xf32>
    %cst_18 = arith.constant dense<0.000000e+00> : vector<16x256xf32>
    %17 = tpu.matmul %15, %16, %cst_18 {dimension_numbers = #tpu.dot_dimension_numbers<[1], [0], [0], [1], [0, 0, 1, 1], [], []>} : vector<16x64xf32>, vector<64x256xf32>, vector<16x256xf32> -> vector<16x256xf32>
    %18 = vector.shape_cast %17 : vector<16x256xf32> to vector<2x8x256xf32>
    %19 = vector.extract_strided_slice %10 {offsets = [0, 0], sizes = [2, 256], strides = [1, 1]} : vector<2x512xf32> to vector<2x256xf32>
    %20 = vector.shape_cast %19 : vector<2x256xf32> to vector<2x1x256xf32>
    %21 = vector.broadcast %20 : vector<2x1x256xf32> to vector<2x8x256xf32>
    %22 = arith.addf %21, %14 : vector<2x8x256xf32>
    %23 = math.tanh %22 : vector<2x8x256xf32>
    %24 = vector.extract_strided_slice %10 {offsets = [0, 256], sizes = [2, 256], strides = [1, 1]} : vector<2x512xf32> to vector<2x256xf32>
    %25 = vector.shape_cast %24 : vector<2x256xf32> to vector<2x1x256xf32>
    %26 = vector.broadcast %25 : vector<2x1x256xf32> to vector<2x8x256xf32>
    %27 = arith.addf %26, %18 : vector<2x8x256xf32>
    %28 = math.tanh %27 : vector<2x8x256xf32>
    %29 = vector.extract_strided_slice %6 {offsets = [0, 0], sizes = [1, 256], strides = [1, 1]} : vector<1x512xf32> to vector<1x256xf32>
    %30 = vector.shape_cast %29 : vector<1x256xf32> to vector<1x1x256xf32>
    %31 = vector.broadcast %30 : vector<1x1x256xf32> to vector<2x8x256xf32>
    %32 = arith.mulf %23, %31 : vector<2x8x256xf32>
    %cst_19 = arith.constant dense<0.000000e+00> : vector<2x8xf32>
    %33 = vector.multi_reduction <add>, %32, %cst_19 [2] : vector<2x8x256xf32> to vector<2x8xf32>
    %34 = vector.extract_strided_slice %6 {offsets = [0, 256], sizes = [1, 256], strides = [1, 1]} : vector<1x512xf32> to vector<1x256xf32>
    %35 = vector.shape_cast %34 : vector<1x256xf32> to vector<1x1x256xf32>
    %36 = vector.broadcast %35 : vector<1x1x256xf32> to vector<2x8x256xf32>
    %37 = arith.mulf %28, %36 : vector<2x8x256xf32>
    %cst_20 = arith.constant dense<0.000000e+00> : vector<2x8xf32>
    %38 = vector.multi_reduction <add>, %37, %cst_20 [2] : vector<2x8x256xf32> to vector<2x8xf32>
    %cst_21 = arith.constant dense<0xFF800000> : vector<2xf32>
    %39 = vector.multi_reduction <maximumf>, %33, %cst_21 [1] : vector<2x8xf32> to vector<2xf32>
    %40 = vector.shape_cast %39 : vector<2xf32> to vector<2x1xf32>
    %41 = vector.broadcast %40 : vector<2x1xf32> to vector<2x8xf32>
    %42 = arith.subf %33, %41 : vector<2x8xf32>
    %43 = math.exp %42 : vector<2x8xf32>
    %cst_22 = arith.constant dense<0.000000e+00> : vector<2xf32>
    %44 = vector.multi_reduction <add>, %43, %cst_22 [1] : vector<2x8xf32> to vector<2xf32>
    %45 = vector.shape_cast %44 : vector<2xf32> to vector<2x1xf32>
    %46 = tpu.reciprocal %45 {approx = true} : vector<2x1xf32> -> vector<2x1xf32>
    %47 = vector.broadcast %46 : vector<2x1xf32> to vector<2x8xf32>
    %48 = arith.mulf %43, %47 : vector<2x8xf32>
    %cst_23 = arith.constant dense<0xFF800000> : vector<2xf32>
    %49 = vector.multi_reduction <maximumf>, %38, %cst_23 [1] : vector<2x8xf32> to vector<2xf32>
    %50 = vector.shape_cast %49 : vector<2xf32> to vector<2x1xf32>
    %51 = vector.broadcast %50 : vector<2x1xf32> to vector<2x8xf32>
    %52 = arith.subf %38, %51 : vector<2x8xf32>
    %53 = math.exp %52 : vector<2x8xf32>
    %cst_24 = arith.constant dense<0.000000e+00> : vector<2xf32>
    %54 = vector.multi_reduction <add>, %53, %cst_24 [1] : vector<2x8xf32> to vector<2xf32>
    %55 = vector.shape_cast %54 : vector<2xf32> to vector<2x1xf32>
    %56 = tpu.reciprocal %55 {approx = true} : vector<2x1xf32> -> vector<2x1xf32>
    %57 = vector.broadcast %56 : vector<2x1xf32> to vector<2x8xf32>
    %58 = arith.mulf %53, %57 : vector<2x8xf32>
    %59 = vector.shape_cast %48 : vector<2x8xf32> to vector<2x8x1xf32>
    %60 = vector.broadcast %59 : vector<2x8x1xf32> to vector<2x8x64xf32>
    %61 = arith.mulf %60, %0 : vector<2x8x64xf32>
    %cst_25 = arith.constant dense<0.000000e+00> : vector<2x64xf32>
    %62 = vector.multi_reduction <add>, %61, %cst_25 [1] : vector<2x8x64xf32> to vector<2x64xf32>
    %63 = vector.shape_cast %58 : vector<2x8xf32> to vector<2x8x1xf32>
    %64 = vector.broadcast %63 : vector<2x8x1xf32> to vector<2x8x64xf32>
    %65 = arith.mulf %64, %1 : vector<2x8x64xf32>
    %cst_26 = arith.constant dense<0.000000e+00> : vector<2x64xf32>
    %66 = vector.multi_reduction <add>, %65, %cst_26 [1] : vector<2x8x64xf32> to vector<2x64xf32>
    %c0_27 = arith.constant 0 : index
    %c0_28 = arith.constant 0 : index
    %67 = vector.load %arg11[%c0_27, %c0_28] : memref<2x32xf32, #tpu.memory_space<vmem>>, vector<1x32xf32>
    %c1 = arith.constant 1 : index
    %c0_29 = arith.constant 0 : index
    %68 = vector.load %arg11[%c1, %c0_29] : memref<2x32xf32, #tpu.memory_space<vmem>>, vector<1x32xf32>
    %c0_30 = arith.constant 0 : index
    %c0_31 = arith.constant 0 : index
    %69 = vector.load %arg9[%c0_30, %c0_31] : memref<64x32xf32, #tpu.memory_space<vmem>>, vector<64x32xf32>
    %cst_32 = arith.constant dense<0.000000e+00> : vector<2x32xf32>
    %70 = tpu.matmul %62, %69, %cst_32 {dimension_numbers = #tpu.dot_dimension_numbers<[1], [0], [0], [1], [0, 0, 1, 1], [], []>} : vector<2x64xf32>, vector<64x32xf32>, vector<2x32xf32> -> vector<2x32xf32>
    %71 = vector.broadcast %67 : vector<1x32xf32> to vector<2x32xf32>
    %72 = arith.addf %70, %71 : vector<2x32xf32>
    %73 = math.tanh %72 : vector<2x32xf32>
    %c0_33 = arith.constant 0 : index
    %c0_34 = arith.constant 0 : index
    %74 = vector.load %arg9[%c0_33, %c0_34] : memref<64x32xf32, #tpu.memory_space<vmem>>, vector<64x32xf32>
    %cst_35 = arith.constant dense<0.000000e+00> : vector<2x32xf32>
    %75 = tpu.matmul %66, %74, %cst_35 {dimension_numbers = #tpu.dot_dimension_numbers<[1], [0], [0], [1], [0, 0, 1, 1], [], []>} : vector<2x64xf32>, vector<64x32xf32>, vector<2x32xf32> -> vector<2x32xf32>
    %76 = vector.broadcast %67 : vector<1x32xf32> to vector<2x32xf32>
    %77 = arith.addf %75, %76 : vector<2x32xf32>
    %78 = math.tanh %77 : vector<2x32xf32>
    %c0_36 = arith.constant 0 : index
    %c0_37 = arith.constant 0 : index
    %79 = vector.load %arg10[%c0_36, %c0_37] : memref<64x32xf32, #tpu.memory_space<vmem>>, vector<64x32xf32>
    %cst_38 = arith.constant dense<0.000000e+00> : vector<2x32xf32>
    %80 = tpu.matmul %3, %79, %cst_38 {dimension_numbers = #tpu.dot_dimension_numbers<[1], [0], [0], [1], [0, 0, 1, 1], [], []>} : vector<2x64xf32>, vector<64x32xf32>, vector<2x32xf32> -> vector<2x32xf32>
    %81 = vector.broadcast %68 : vector<1x32xf32> to vector<2x32xf32>
    %82 = arith.addf %80, %81 : vector<2x32xf32>
    %83 = math.tanh %82 : vector<2x32xf32>
    %c0_39 = arith.constant 0 : index
    %c0_40 = arith.constant 0 : index
    %84 = vector.load %arg12[%c0_39, %c0_40] : memref<96x64xf32, #tpu.memory_space<vmem>>, vector<32x64xf32>
    %cst_41 = arith.constant dense<0.000000e+00> : vector<2x64xf32>
    %85 = tpu.matmul %73, %84, %cst_41 {dimension_numbers = #tpu.dot_dimension_numbers<[1], [0], [0], [1], [0, 0, 1, 1], [], []>} : vector<2x32xf32>, vector<32x64xf32>, vector<2x64xf32> -> vector<2x64xf32>
    %c32 = arith.constant 32 : index
    %c0_42 = arith.constant 0 : index
    %86 = vector.load %arg12[%c32, %c0_42] : memref<96x64xf32, #tpu.memory_space<vmem>>, vector<32x64xf32>
    %cst_43 = arith.constant dense<0.000000e+00> : vector<2x64xf32>
    %87 = tpu.matmul %78, %86, %cst_43 {dimension_numbers = #tpu.dot_dimension_numbers<[1], [0], [0], [1], [0, 0, 1, 1], [], []>} : vector<2x32xf32>, vector<32x64xf32>, vector<2x64xf32> -> vector<2x64xf32>
    %88 = arith.addf %85, %87 : vector<2x64xf32>
    %c64 = arith.constant 64 : index
    %c0_44 = arith.constant 0 : index
    %89 = vector.load %arg12[%c64, %c0_44] : memref<96x64xf32, #tpu.memory_space<vmem>>, vector<32x64xf32>
    %cst_45 = arith.constant dense<0.000000e+00> : vector<2x64xf32>
    %90 = tpu.matmul %83, %89, %cst_45 {dimension_numbers = #tpu.dot_dimension_numbers<[1], [0], [0], [1], [0, 0, 1, 1], [], []>} : vector<2x32xf32>, vector<32x64xf32>, vector<2x64xf32> -> vector<2x64xf32>
    %91 = arith.addf %88, %90 : vector<2x64xf32>
    %c0_46 = arith.constant 0 : index
    %c0_47 = arith.constant 0 : index
    %92 = vector.load %arg13[%c0_46, %c0_47] : memref<1x64xf32, #tpu.memory_space<vmem>>, vector<1x64xf32>
    %93 = vector.broadcast %92 : vector<1x64xf32> to vector<2x64xf32>
    %94 = arith.addf %91, %93 : vector<2x64xf32>
    %cst_48 = arith.constant 0.000000e+00 : f32
    %95 = vector.broadcast %cst_48 : f32 to vector<2x48xf32>
    %96 = tpu.concatenate %94, %48, %58, %95 in 1 : vector<2x64xf32>, vector<2x8xf32>, vector<2x8xf32>, vector<2x48xf32> -> vector<2x128xf32>
    %c0_49 = arith.constant 0 : index
    %c0_50 = arith.constant 0 : index
    %97 = vector.load %arg14[%c0_49, %c0_50] : memref<2x128xf32, #tpu.memory_space<vmem>>, vector<2x128xf32>
    tpu.vector_store %arg14[%c0_49, %c0_50], %96 {strides = array<i32>} : memref<2x128xf32, #tpu.memory_space<vmem>>, vector<2x128xf32>,
    return
  }
  func.func @transform_0(%arg0: i32) -> (i32, i32, i32) {
    %c0_i32 = arith.constant 0 : i32
    %c0_i32_0 = arith.constant 0 : i32
    %c0_i32_1 = arith.constant 0 : i32
    return %arg0, %c0_i32, %c0_i32_0 : i32, i32, i32
  }
  func.func @transform_1(%arg0: i32) -> (i32, i32, i32) {
    %c0_i32 = arith.constant 0 : i32
    %c0_i32_0 = arith.constant 0 : i32
    %c0_i32_1 = arith.constant 0 : i32
    return %arg0, %c0_i32, %c0_i32_0 : i32, i32, i32
  }
  func.func @transform_2(%arg0: i32) -> (i32, i32) {
    %c0_i32 = arith.constant 0 : i32
    %c0_i32_0 = arith.constant 0 : i32
    return %arg0, %c0_i32 : i32, i32
  }
  func.func @transform_3(%arg0: i32) -> (i32, i32) {
    %c0_i32 = arith.constant 0 : i32
    %c0_i32_0 = arith.constant 0 : i32
    return %arg0, %c0_i32 : i32, i32
  }
  func.func @transform_4(%arg0: i32) -> (i32, i32) {
    %c0_i32 = arith.constant 0 : i32
    %c0_i32_0 = arith.constant 0 : i32
    %c0_i32_1 = arith.constant 0 : i32
    return %c0_i32, %c0_i32_0 : i32, i32
  }
  func.func @transform_5(%arg0: i32) -> (i32, i32) {
    %c0_i32 = arith.constant 0 : i32
    %c0_i32_0 = arith.constant 0 : i32
    %c0_i32_1 = arith.constant 0 : i32
    return %c0_i32, %c0_i32_0 : i32, i32
  }
  func.func @transform_6(%arg0: i32) -> (i32, i32) {
    %c0_i32 = arith.constant 0 : i32
    %c0_i32_0 = arith.constant 0 : i32
    %c0_i32_1 = arith.constant 0 : i32
    return %c0_i32, %c0_i32_0 : i32, i32
  }
  func.func @transform_7(%arg0: i32) -> (i32, i32) {
    %c0_i32 = arith.constant 0 : i32
    %c0_i32_0 = arith.constant 0 : i32
    %c0_i32_1 = arith.constant 0 : i32
    return %c0_i32, %c0_i32_0 : i32, i32
  }
  func.func @transform_8(%arg0: i32) -> (i32, i32) {
    %c0_i32 = arith.constant 0 : i32
    %c0_i32_0 = arith.constant 0 : i32
    %c0_i32_1 = arith.constant 0 : i32
    return %c0_i32, %c0_i32_0 : i32, i32
  }
  func.func @transform_9(%arg0: i32) -> (i32, i32) {
    %c0_i32 = arith.constant 0 : i32
    %c0_i32_0 = arith.constant 0 : i32
    %c0_i32_1 = arith.constant 0 : i32
    return %c0_i32, %c0_i32_0 : i32, i32
  }
  func.func @transform_10(%arg0: i32) -> (i32, i32) {
    %c0_i32 = arith.constant 0 : i32
    %c0_i32_0 = arith.constant 0 : i32
    %c0_i32_1 = arith.constant 0 : i32
    return %c0_i32, %c0_i32_0 : i32, i32
  }
  func.func @transform_11(%arg0: i32) -> (i32, i32) {
    %c0_i32 = arith.constant 0 : i32
    %c0_i32_0 = arith.constant 0 : i32
    %c0_i32_1 = arith.constant 0 : i32
    return %c0_i32, %c0_i32_0 : i32, i32
  }
  func.func @transform_12(%arg0: i32) -> (i32, i32) {
    %c0_i32 = arith.constant 0 : i32
    %c0_i32_0 = arith.constant 0 : i32
    %c0_i32_1 = arith.constant 0 : i32
    return %c0_i32, %c0_i32_0 : i32, i32
  }
  func.func @transform_13(%arg0: i32) -> (i32, i32) {
    %c0_i32 = arith.constant 0 : i32
    %c0_i32_0 = arith.constant 0 : i32
    return %arg0, %c0_i32 : i32, i32
  }
}

</mosaic_0001>

<bundles_post_ra>
// kernel: tpu_custom_call.1
= control target key start
LH: loop header
LB: loop body
LE: loop exit
PB: predicated region body
PF: predicated region fallthrough
CT: control target
= control target key end

     0   :  { %18 = vsyncpa [#allocation3], 0  ;;  %s2214_s0 = inlined_call_operand.hbm [shape: f32[2,8,64], index: 0, kind: input, shape index: {}]   ;;  %s2215_s1 = inlined_call_operand.hbm [shape: f32[2,8,64], index: 1, kind: input, shape index: {}]   ;;  %s2216_s2 = inlined_call_operand.vmem [shape: f32[2,64], index: 2, kind: input, shape index: {}]   ;;  %s2217_s3 = inlined_call_operand.hbm [shape: f32[2,64], index: 3, kind: input, shape index: {}]   ;;  %s2218_s4 = inlined_call_operand.vmem [shape: f32[64,512], index: 4, kind: input, shape index: {}]   ;;  %s2219_s5 = inlined_call_operand.hbm [shape: f32[64,256], index: 5, kind: input, shape index: {}]   ;;  %s2220_s6 = inlined_call_operand.hbm [shape: f32[64,256], index: 6, kind: input, shape index: {}]   ;;  %s2221_s7 = inlined_call_operand.vmem [shape: f32[2,512], index: 7, kind: input, shape index: {}]   ;;  %s2222_s8 = inlined_call_operand.vmem [shape: f32[64,32], index: 8, kind: input, shape index: {}]   ;;  %s2223_s9 = inlined_call_operand.vmem [shape: f32[64,32], index: 9, kind: input, shape index: {}]   ;;  %s2224_s10 = inlined_call_operand.vmem [shape: f32[2,32], index: 10, kind: input, shape index: {}]   ;;  %s2225_s11 = inlined_call_operand.vmem [shape: f32[96,64], index: 11, kind: input, shape index: {}]   ;;  %s2226_s12 = inlined_call_operand.vmem [shape: f32[1,64], index: 12, kind: input, shape index: {}]   ;;  %s2227_s13 = inlined_call_operand.hbm [shape: f32[2,128], index: 13, kind: output, shape index: {}]  }
   0x1   :  { %19 = vsyncpa [#allocation6], 0 }
   0x2   :  { %20 = vsyncpa [#allocation9], 0 }
   0x3   :  { %21 = vsyncpa [#allocation4], 0  ;;  %s1747_s25 = smov [#allocation5]   ;;  %s1748_s27 = smov [#allocation8]  }
   0x4   :  { %s39_s26 = sshll.u32 %s1747_s25, 4  ;;  %s65_s28 = sshll.u32 %s1748_s27, 4  ;;  %s40_s26 = int_to_ptr.vmem [resolvable:$true] %s39_s26  ;;  %s66_s28 = int_to_ptr.vmem [resolvable:$true] %s65_s28 }
   0x5   :  { %s1627_s29 = scalar_lea.vmem %s40_s26, 256  ;;  %p1632_p1 = scmp.lt.s32.totalorder %s40_s26, %s40_s26 }
   0x6   :  { %p1628_p0 = scmp.ne.s32.totalorder %s40_s26, %s1627_s29  ;;  %p1633_p2 = scmp.lt.s32.totalorder %s1627_s29, %s1627_s29 }
   0x8   :  { %p1634_p3 = por %p1633_p2, %p1632_p1 }
   0xa   :  { %p1635_p4 = pnand %p1634_p3, %p1628_p0 }
   0xc   :  { %1638 = shalt.err (!%p1635_p4)
}
   0xd   :  { %s1749_s30 = smov 128   ;;  %s1750_s14 = smov 8  }
   0xe   :  { %45 = dma.hbm_to_vmem [thread:$0]  %s2215_s1, 256, %s40_s26, [#allocation6], %s1749_s30, %s1749_s30, %s1750_s14  }
   0xf   :  { %s1647_s17 = scalar_lea.vmem %s66_s28, 2048  ;;  %p1652_p6 = scmp.lt.s32.totalorder %s66_s28, %s66_s28 }
  0x10   :  { %p1648_p5 = scmp.ne.s32.totalorder %s66_s28, %s1647_s17  ;;  %p1653_p7 = scmp.lt.s32.totalorder %s1647_s17, %s1647_s17 }
  0x12   :  { %p1654_p8 = por %p1653_p7, %p1652_p6 }
  0x14   :  { %p1655_p9 = pnand %p1654_p8, %p1648_p5 }
  0x16   :  { %1658 = shalt.err (!%p1655_p9)
}
  0x17   :  { %s1751_s18 = smov 256   ;;  %s1752_s19 = smov 16  }
  0x18   :  { %71 = dma.hbm_to_vmem [thread:$0]  %s2219_s5, 2048, %s66_s28, [#allocation9], %s1751_s18, %s1751_s18, %s1752_s19  }
  0x19   :  { %s1753_s22 = smov [#allocation2]   ;;  %s1754_s24 = smov [#allocation7]  }
  0x1a   :  { %s27_s23 = sshll.u32 %s1753_s22, 4  ;;  %s54_s1 = sshll.u32 %s1754_s24, 4  ;;  %s28_s23 = int_to_ptr.vmem [resolvable:$true] %s27_s23  ;;  %s55_s1 = int_to_ptr.vmem [resolvable:$true] %s54_s1 }
  0x1b   :  { %s1667_s25 = scalar_lea.vmem %s28_s23, 256  ;;  %p1672_p11 = scmp.lt.s32.totalorder %s28_s23, %s28_s23 }
  0x1c   :  { %p1668_p10 = scmp.ne.s32.totalorder %s28_s23, %s1667_s25  ;;  %p1673_p12 = scmp.lt.s32.totalorder %s1667_s25, %s1667_s25 }
  0x1e   :  { %p1674_p13 = por %p1673_p12, %p1672_p11 }
  0x20   :  { %p1675_p0 = pnand %p1674_p13, %p1668_p10 }
  0x22   :  { %1678 = shalt.err (!%p1675_p0)
}
  0x23   :  { %33 = dma.hbm_to_vmem [thread:$0]  %s2214_s0, 256, %s28_s23, [#allocation3], %s1749_s30, %s1749_s30, %s1750_s14  }
  0x24   :  { %s1687_s29 = scalar_lea.vmem %s55_s1, 32  ;;  %p1692_p2 = scmp.lt.s32.totalorder %s55_s1, %s55_s1 }
  0x25   :  { %p1688_p1 = scmp.ne.s32.totalorder %s55_s1, %s1687_s29  ;;  %p1693_p3 = scmp.lt.s32.totalorder %s1687_s29, %s1687_s29 }
  0x27   :  { %p1694_p4 = por %p1693_p3, %p1692_p2 }
  0x29   :  { %p1695_p5 = pnand %p1694_p4, %p1688_p1 }
  0x2b   :  { %1698 = shalt.err (!%p1695_p5)
}
  0x2c   :  { %57 = dma.hbm_to_vmem [thread:$0]  %s2217_s3, 32, %s55_s1, [#allocation6]  }
  0x2d   :  { %s1755_s15 = smov [#allocation10]  }
  0x2e   :  { %s77_s16 = sshll.u32 %s1755_s15, 4  ;;  %s78_s16 = int_to_ptr.vmem [resolvable:$true] %s77_s16 }
  0x2f   :  { %s1707_s17 = scalar_lea.vmem %s78_s16, 2048  ;;  %p1712_p7 = scmp.lt.s32.totalorder %s78_s16, %s78_s16 }
  0x30   :  { %p1708_p6 = scmp.ne.s32.totalorder %s78_s16, %s1707_s17  ;;  %p1713_p8 = scmp.lt.s32.totalorder %s1707_s17, %s1707_s17 }
  0x32   :  { %p1714_p9 = por %p1713_p8, %p1712_p7 }
  0x34   :  { %p1715_p10 = pnand %p1714_p9, %p1708_p6 }
  0x36   :  { %1718 = shalt.err (!%p1715_p10)
}
  0x37   :  { %83 = dma.hbm_to_vmem [thread:$0]  %s2220_s6, 2048, %s78_s16, [#allocation9], %s1751_s18, %s1751_s18, %s1752_s19  }
  0x38   :  { %1739 = dma.done.wait [#allocation3], 256  }
  0x39   :  { %1740 = vsyncadd [#allocation3], 4294967040 }
  0x3a   :  { %1741 = dma.done.wait [#allocation6], 288  }
  0x3b   :  { %1742 = vsyncadd [#allocation6], 4294967008 }
  0x3c   :  { %1743 = dma.done.wait [#allocation9], 4096  }
  0x3d   :  { %1744 = vsyncadd [#allocation9], 4294963200  ;;  %v1756_v0 = vmov 0.0   ;;  %v147_v1 = vld [vmem:[%s2218_s4 + $0xe8] sm:$0xff]  ;;  %v149_v2 = vld [vmem:[%s2218_s4 + $0xf8] sm:$0xff]  ;;  %vm187_vm0 = vcmask 523264  }
  0x3e   :  { %255 = vmatprep.mubr.f32.mxu0 %v1756_v0  ;;  %326 = vmatprep.mubr.f32.mxu1 %v1756_v0  ;;  %v146_v3 = vld [vmem:[%s2218_s4 + $0xe0] sm:$0xff]  ;;  %v148_v4 = vld [vmem:[%s2218_s4 + $0xf0] sm:$0xff]  ;;  %v143_v5 = vld [vmem:[%s2218_s4 + $0xc8] sm:$0xff]  ;;  %vm706_vm1 = vcmask 1041409   ;;  %vm709_vm2 = vcmask 58368   ;;  %vm1759_vm3 = vmmov 0  }
  0x3f   :  { %207 = vmatprep.subr.mxu0 %v147_v1  ;;  %278 = vmatprep.subr.mxu1 %v149_v2  ;;  %v145_v6 = vld [vmem:[%s2218_s4 + $0xd8] sm:$0xff]  ;;  %v142_v7 = vld [vmem:[%s2218_s4 + $0xc0] sm:$0xff]  ;;  %v144_v8 = vld [vmem:[%s2218_s4 + $0xd0] sm:$0xff]  ;;  %vm1144_vm4 = vcmask 261120   ;;  %vm1400_vm5 = vcmask 588800   ;;  %vm1402_vm6 = vcmask 654336  }
  0x40   :  { %208 = vmatpush1.msra.mxu0 %v146_v3  ;;  %279 = vmatpush1.msra.mxu1 %v148_v4  ;;  %v139_v9 = vld [vmem:[%s2218_s4 + $0xa8] sm:$0xff]  ;;  %v141_v10 = vld [vmem:[%s2218_s4 + $0xb8] sm:$0xff]  ;;  %v138_v11 = vld [vmem:[%s2218_s4 + $0xa0] sm:$0xff] }
  0x41   :  { %209 = vmatprep.subr.mxu0 %v143_v5  ;;  %280 = vmatprep.subr.mxu1 %v145_v6  ;;  %v140_v12 = vld [vmem:[%s2218_s4 + $0xb0] sm:$0xff]  ;;  %v135_v13 = vld [vmem:[%s2218_s4 + $0x88] sm:$0xff]  ;;  %v137_v14 = vld [vmem:[%s2218_s4 + $0x98] sm:$0xff] }
  0x42   :  { %210 = vmatpush1.msra.mxu0 %v142_v7  ;;  %281 = vmatpush1.msra.mxu1 %v144_v8  ;;  %v134_v15 = vld [vmem:[%s2218_s4 + $0x80] sm:$0xff]  ;;  %v136_v16 = vld [vmem:[%s2218_s4 + $0x90] sm:$0xff]  ;;  %v131_v17 = vld [vmem:[%s2218_s4 + $0x68] sm:$0xff]  ;;  %v151_v7 = vlaneseq }
  0x43   :  { %211 = vmatprep.subr.mxu0 %v139_v9  ;;  %282 = vmatprep.subr.mxu1 %v141_v10  ;;  %v133_v18 = vld [vmem:[%s2218_s4 + $0x78] sm:$0xff]  ;;  %v130_v19 = vld [vmem:[%s2218_s4 + $0x60] sm:$0xff]  ;;  %v132_v20 = vld [vmem:[%s2218_s4 + $0x70] sm:$0xff] }
  0x44   :  { %212 = vmatpush1.msra.mxu0 %v138_v11  ;;  %283 = vmatpush1.msra.mxu1 %v140_v12  ;;  %v127_v21 = vld [vmem:[%s2218_s4 + $0x48] sm:$0xff]  ;;  %v129_v22 = vld [vmem:[%s2218_s4 + $0x58] sm:$0xff]  ;;  %v126_v23 = vld [vmem:[%s2218_s4 + $0x40] sm:$0xff]  ;;  %v1978_v8 = vshrl.u32 %v151_v7, 7 }
  0x45   :  { %213 = vmatprep.subr.mxu0 %v135_v13  ;;  %284 = vmatprep.subr.mxu1 %v137_v14  ;;  %v128_v24 = vld [vmem:[%s2218_s4 + $0x50] sm:$0xff]  ;;  %v123_v25 = vld [vmem:[%s2218_s4 + $0x28] sm:$0xff]  ;;  %v125_v26 = vld [vmem:[%s2218_s4 + $0x38] sm:$0xff] }
  0x46   :  { %214 = vmatpush1.msra.mxu0 %v134_v15  ;;  %285 = vmatpush1.msra.mxu1 %v136_v16  ;;  %v122_v27 = vld [vmem:[%s2218_s4 + $0x20] sm:$0xff]  ;;  %v124_v28 = vld [vmem:[%s2218_s4 + $0x30] sm:$0xff]  ;;  %v119_v29 = vld [vmem:[%s2218_s4 + $0x8] sm:$0xff]  ;;  %v1981_v9 = vsub.s32 0, %v1978_v8  ;;  %v161_v11 = vsub.s32 4, %v1978_v8  ;;  %v157_v12 = vsub.s32 2, %v1978_v8 }
  0x47   :  { %215 = vmatprep.subr.mxu0 %v131_v17  ;;  %286 = vmatprep.subr.mxu1 %v133_v18  ;;  %v121_v30 = vld [vmem:[%s2218_s4 + $0x18] sm:$0xff]  ;;  %v118_v31 = vld [vmem:[%s2218_s4] sm:$0xff]  ;;  %v120_v32 = vld [vmem:[%s2218_s4 + $0x10] sm:$0xff]  ;;  %v165_v13 = vsub.s32 6, %v1978_v8  ;;  %v1757_v17 = vmov 1966171168  }
  0x48   :  { %216 = vmatpush1.msra.mxu0 %v130_v19  ;;  %287 = vmatpush1.msra.mxu1 %v132_v20  ;;  %v115_v33 = vld [vmem:[%s2216_s2] sm:$0x3]  ;;  %v347_v36 = vld [vmem:[#allocation8 + $0x70] sm:$0xff]  ;;  %v346_v38 = vld [vmem:[#allocation8 + $0x68] sm:$0xff]  ;;  %v535_v18 = vunpack.c.l.s4 %v1757_v17 }
  0x49   :  { %217 = vmatprep.subr.mxu0 %v127_v21  ;;  %288 = vmatprep.subr.mxu1 %v129_v22  ;;  %v348_v34 = vld [vmem:[#allocation8 + $0x78] sm:$0xff]  ;;  %v446_v37 = vld [vmem:[#allocation10 + $0x70] sm:$0xff]  ;;  %v445_v39 = vld [vmem:[#allocation10 + $0x68] sm:$0xff] }
  0x4a   :  { %218 = vmatpush1.msra.mxu0 %v126_v23  ;;  %289 = vmatpush1.msra.mxu1 %v128_v24  ;;  %v447_v35 = vld [vmem:[#allocation10 + $0x78] sm:$0xff]  ;;  %v345_v40 = vld [vmem:[#allocation8 + $0x60] sm:$0xff]  ;;  %v343_v44 = vld [vmem:[#allocation8 + $0x50] sm:$0xff]  ;;  %v536_v24 = vunpack.c.0.s8 %v535_v18 }
  0x4b   :  { %219 = vmatprep.subr.mxu0 %v123_v25  ;;  %290 = vmatprep.subr.mxu1 %v125_v26  ;;  %v444_v41 = vld [vmem:[#allocation10 + $0x60] sm:$0xff]  ;;  %v344_v42 = vld [vmem:[#allocation8 + $0x58] sm:$0xff]  ;;  %v442_v45 = vld [vmem:[#allocation10 + $0x50] sm:$0xff] }
  0x4c   :  { %220 = vmatpush1.msra.mxu0 %v122_v27  ;;  %291 = vmatpush1.msra.mxu1 %v124_v28  ;;  %v443_v43 = vld [vmem:[#allocation10 + $0x58] sm:$0xff]  ;;  %v342_v46 = vld [vmem:[#allocation8 + $0x48] sm:$0xff]  ;;  %v341_v48 = vld [vmem:[#allocation8 + $0x40] sm:$0xff] }
  0x4d   :  { %221 = vmatprep.subr.mxu0 %v119_v29  ;;  %292 = vmatprep.subr.mxu1 %v121_v30  ;;  %v441_v47 = vld [vmem:[#allocation10 + $0x48] sm:$0xff]  ;;  %v440_v49 = vld [vmem:[#allocation10 + $0x40] sm:$0xff]  ;;  %v340_v50 = vld [vmem:[#allocation8 + $0x38] sm:$0xff] }
  0x4e   :  { %222 = vmatpush1.msra.mxu0 %v118_v31  ;;  %293 = vmatpush1.msra.mxu1 %v120_v32  ;;  %v439_v51 = vld [vmem:[#allocation10 + $0x38] sm:$0xff]  ;;  %v339_v52 = vld [vmem:[#allocation8 + $0x30] sm:$0xff]  ;;  %v338_v54 = vld [vmem:[#allocation8 + $0x28] sm:$0xff]  ;;  %v539_v32 = vsub.s32 %v536_v24, %v1978_v8 }
  0x4f   :  { %1422 = vmatmul.mubr.msk.f32.vlgmr.msra.gmra.mxu0 %vm187_vm0, %v115_v33  ;;  %371 = vmatprep.subr.mxu0 %v348_v34  ;;  %v438_v53 = vld [vmem:[#allocation10 + $0x30] sm:$0xff]  ;;  %v437_v55 = vld [vmem:[#allocation10 + $0x28] sm:$0xff]  ;;  %v337_v56 = vld [vmem:[#allocation8 + $0x20] sm:$0xff] }
  0x50   :  { %470 = vmatprep.subr.mxu1 %v447_v35  ;;  %1423 = vmatmul.mubr.msk.f32.vlgmr.msra.gmra.mxu1 %vm187_vm0, %v115_v33  ;;  %v436_v57 = vld [vmem:[#allocation10 + $0x20] sm:$0xff]  ;;  %v336_v58 = vld [vmem:[#allocation8 + $0x18] sm:$0xff]  ;;  %v335_v60 = vld [vmem:[#allocation8 + $0x10] sm:$0xff] }
  0x51   :  { %372 = vmatpush1.msra.mxu0 %v347_v36  ;;  %471 = vmatpush1.msra.mxu1 %v446_v37  ;;  %v435_v59 = vld [vmem:[#allocation10 + $0x18] sm:$0xff]  ;;  %v434_v61 = vld [vmem:[#allocation10 + $0x10] sm:$0xff]  ;;  %v334_v62 = vld [vmem:[#allocation8 + $0x8] sm:$0xff] }
  0x52   :  { %373 = vmatprep.subr.mxu0 %v346_v38  ;;  %472 = vmatprep.subr.mxu1 %v445_v39  ;;  %v433_v63 = vld [vmem:[#allocation10 + $0x8] sm:$0xff]  ;;  %v333_v1 = vld [vmem:[#allocation8] sm:$0xff]  ;;  %v1969_v6 = vld [vmem:[#allocation5 + $0x8] sm:$0xff] }
  0x53   :  { %374 = vmatpush1.msra.mxu0 %v345_v40  ;;  %473 = vmatpush1.msra.mxu1 %v444_v41  ;;  %v432_v2 = vld [vmem:[#allocation10] sm:$0xff]  ;;  %v1957_v4 = vld [vmem:[#allocation5] sm:$0xff] }
  0x54   :  { %375 = vmatprep.subr.mxu0 %v344_v42  ;;  %474 = vmatprep.subr.mxu1 %v443_v43  ;;  %v1955_v3 = vld [vmem:[#allocation2] sm:$0xff]  ;;  %v1967_v5 = vld [vmem:[#allocation2 + $0x8] sm:$0xff]  ;;  %v2003_v43 = vsub.s32 1, %v1978_v8 }
  0x55   :  { %376 = vmatpush1.msra.mxu0 %v343_v44  ;;  %475 = vmatpush1.msra.mxu1 %v442_v45  ;;  %v1986_v10 = vld [vmem:[%s2221_s7] sm:$0xff] }
  0x56   :  { %377 = vmatprep.subr.mxu0 %v342_v46  ;;  %476 = vmatprep.subr.mxu1 %v441_v47  ;;  %v154_v14 = vrot.slane %v1986_v10, %v1981_v9  ;;  %v162_v15 = vrot.slane %v1986_v10, %v161_v11  ;;  %v158_v16 = vrot.slane %v1986_v10, %v157_v12 }
  0x57   :  { %378 = vmatpush1.msra.mxu0 %v341_v48  ;;  %477 = vmatpush1.msra.mxu1 %v440_v49  ;;  %v166_v19 = vrot.slane %v1986_v10, %v165_v13 }
  0x58   :  { %379 = vmatprep.subr.mxu0 %v340_v50  ;;  %478 = vmatprep.subr.mxu1 %v439_v51  ;;  %v174_v20 = vrot.slane %v154_v14, %v1981_v9  ;;  %v182_v21 = vrot.slane %v162_v15, %v1981_v9  ;;  %v178_v22 = vrot.slane %v158_v16, %v1981_v9  ;;  %v643_v14 = vsub.s32 3, %v1978_v8 }
  0x59   :  { %380 = vmatpush1.msra.mxu0 %v339_v52  ;;  %479 = vmatpush1.msra.mxu1 %v438_v53  ;;  %v186_v25 = vrot.slane %v166_v19, %v1981_v9  ;;  %v665_v15 = vrot.slane %v1986_v10, 4  ;;  %v640_v16 = vrot.slane %v1986_v10, %v2003_v43 }
  0x5a   :  { %381 = vmatprep.subr.mxu0 %v338_v54  ;;  %480 = vmatprep.subr.mxu1 %v437_v55  ;;  %v644_v17 = vrot.slane %v1986_v10, %v643_v14 }
  0x5b   :  { %382 = vmatpush1.msra.mxu0 %v337_v56  ;;  %481 = vmatpush1.msra.mxu1 %v436_v57  ;;  %v669_v18 = vrot.slane %v665_v15, %v2003_v43  ;;  %v673_v19 = vrot.slane %v665_v15, %v643_v14 }
  0x5c   :  { %383 = vmatprep.subr.mxu0 %v336_v58  ;;  %482 = vmatprep.subr.mxu1 %v435_v59 }
  0x5d   :  { %384 = vmatpush1.msra.mxu0 %v335_v60  ;;  %483 = vmatpush1.msra.mxu1 %v434_v61  ;;  %v683_v24 = vrot.slane %v673_v19, %v2003_v43 }
  0x5e   :  { %385 = vmatprep.subr.mxu0 %v334_v62  ;;  %484 = vmatprep.subr.mxu1 %v433_v63 }
  0x5f   :  { %386 = vmatpush1.msra.mxu0 %v333_v1  ;;  %419 = vmatprep.mubr.f32.mxu0 %v1756_v0 }
  0x60   :  { %485 = vmatpush1.msra.mxu1 %v432_v2  ;;  %518 = vmatprep.mubr.f32.mxu1 %v1756_v0 }
  0x61   :  { %1424 = vmatmul.mubr.msk.f32.vlgmr.msra.gmra.mxu0 %vm187_vm0, %v1955_v3  ;;  %1426 = vmatmul.mubr.msk.f32.vlgmr.msra.gmra.mxu1 %vm187_vm0, %v1957_v4 }
  0x62   :  { %425 = vmatprep.mubr.f32.mxu0 %v1756_v0  ;;  %524 = vmatprep.mubr.f32.mxu1 %v1756_v0 }
  0x63   :  { %1479 = vmatprep.subr.mxu0 %v1756_v0  ;;  %1498 = vmatprep.subr.mxu1 %v1756_v0 }
  0x65   :  { %1425 = vmatmul.mubr.msk.f32.gmra.mxu0 %vm187_vm0, %v1967_v5  ;;  %1427 = vmatmul.mubr.msk.f32.gmra.mxu1 %vm187_vm0, %v1969_v6 }
  0x66   :  { %1495 = vmatprep.mubr.msk.f32.mxu0 %vm1759_vm3, %v1756_v0  ;;  %1514 = vmatprep.mubr.msk.f32.mxu1 %vm1759_vm3, %v1756_v0 }
 0x10f   :  { %v257_v23 = vpop.f32.mrf.mxu0 }
 0x110   :  { %v258_v26 = vadd.f32 %v257_v23, %v174_v20  ;;  %v328_v27 = vpop.f32.mrf.mxu1  ;;  %v650_v20 = vrot.slane %v640_v16, %v2003_v43  ;;  %v679_v23 = vrot.slane %v669_v18, %v2003_v43 }
 0x111   :  { %v259_v28 = vpop.f32.mrf.mxu0  ;;  %v329_v29 = vadd.f32 %v328_v27, %v182_v21  ;;  %v654_v21 = vrot.slane %v644_v17, %v2003_v43 }
 0x112   :  { %v260_v30 = vadd.f32 %v259_v28, %v178_v22  ;;  %v330_v31 = vpop.f32.mrf.mxu1 }
 0x113   :  { %v331_v33 = vadd.f32 %v330_v31, %v186_v25 }
 0x114   :  { %v533_v34 = vcombine.low %v258_v26, %v260_v30 }
 0x115   :  { %v586_v35 = vcombine.low %v329_v29, %v331_v33 }
 0x116   :  { %v540_v36 = vrot.slane %v533_v34, %v539_v32 }
 0x117   :  { %v593_v37 = vrot.slane %v586_v35, %v539_v32 }
 0x118   :  { %v541_v39 = vcombine.high %v540_v36, %v540_v36  ;;  %v548_v40 = vrot.slane %v540_v36, %v539_v32 }
 0x119   :  { %v601_v38 = vrot.slane %v593_v37, %v539_v32  ;;  %v594_v41 = vcombine.high %v593_v37, %v593_v37 }
 0x11a   :  { %v555_v44 = vrot.slane %v541_v39, %v539_v32  ;;  %v559_v45 = vrot.slane %v548_v40, %v1981_v9  ;;  %v563_v51 = vrot.slane %v548_v40, %v2003_v43 }
 0x11b   :  { %v612_v42 = vrot.slane %v601_v38, %v1981_v9  ;;  %v608_v46 = vrot.slane %v594_v41, %v539_v32  ;;  %v616_v52 = vrot.slane %v601_v38, %v2003_v43 }
 0x11c   :  { %v567_v55 = vrot.slane %v555_v44, %v1981_v9  ;;  %v571_v61 = vrot.slane %v555_v44, %v2003_v43  ;;  %v2023_v44 = vand.u32 127, %v151_v7 }
 0x11d   :  { %v620_v58 = vrot.slane %v608_v46, %v1981_v9  ;;  %v624_v1 = vrot.slane %v608_v46, %v2003_v43 }
 0x11e   :  { %v700_v46 = vsub.s32 %v2023_v44, %v1978_v8 }
 0x121   :  { %v421_v47 = vpop.f32.mrf.mxu0  ;;  %v520_v48 = vpop.f32.mrf.mxu1 }
 0x122   :  { %v576_v49 = vadd.f32 %v559_v45, %v421_v47  ;;  %v629_v50 = vadd.f32 %v612_v42, %v520_v48 }
 0x123   :  { %v423_v53 = vpop.f32.mrf.mxu0  ;;  %v522_v54 = vpop.f32.mrf.mxu1 }
 0x124   :  { %1585 = vtanh.f32 %v576_v49  ;;  %v577_v56 = vadd.f32 %v563_v51, %v423_v53  ;;  %v630_v57 = vadd.f32 %v616_v52, %v522_v54 }
 0x125   :  { %1587 = vtanh.f32 %v629_v50  ;;  %v427_v59 = vpop.f32.mrf.mxu0  ;;  %v526_v60 = vpop.f32.mrf.mxu1 }
 0x126   :  { %1589 = vtanh.f32 %v577_v56  ;;  %v578_v62 = vadd.f32 %v567_v55, %v427_v59  ;;  %v631_v63 = vadd.f32 %v620_v58, %v526_v60 }
 0x127   :  { %1591 = vtanh.f32 %v630_v57  ;;  %v429_v2 = vpop.f32.mrf.mxu0  ;;  %v528_v11 = vpop.f32.mrf.mxu1  ;;  %v1758_v57 = vmov 0  }
 0x128   :  { %1593 = vtanh.f32 %v578_v62  ;;  %v579_v12 = vadd.f32 %v571_v61, %v429_v2  ;;  %v632_v13 = vadd.f32 %v624_v1, %v528_v11  ;;  %1584 = vset.pattern.permute.xlu1 %v1758_v57  ;;  %1583 = vset.pattern.permute.xlu0 %v1758_v57 }
 0x129   :  { %1595 = vtanh.f32 %v631_v63 }
 0x12a   :  { %1597 = vtanh.f32 %v579_v12 }
 0x12b   :  { %1599 = vtanh.f32 %v632_v13 }
 0x131   :  { %v1586_v22 = vpop.eup %1585 }
 0x132   :  { %v1588_v25 = vpop.eup %1587  ;;  %v655_v28 = vmul.f32 %v1586_v22, %v650_v20 }
 0x133   :  { %v1590_v26 = vpop.eup %1589  ;;  %v684_v31 = vmul.f32 %v1588_v25, %v679_v23 }
 0x134   :  { %v1592_v27 = vpop.eup %1591  ;;  %v656_v29 = vmul.f32 %v1590_v26, %v654_v21 }
 0x135   :  { %v1594_v30 = vpop.eup %1593  ;;  %v685_v10 = vmul.f32 %v1592_v27, %v683_v24 }
 0x136   :  { %v1596_v32 = vpop.eup %1595  ;;  %v659_v33 = vadd.f32 %v656_v29, %v655_v28  ;;  %v657_v37 = vmul.f32 %v1594_v30, %v650_v20 }
 0x137   :  { %v1598_v34 = vpop.eup %1597  ;;  %v688_v35 = vadd.f32 %v685_v10, %v684_v31  ;;  %v686_v39 = vmul.f32 %v1596_v32, %v679_v23 }
 0x138   :  { %v1600_v36 = vpop.eup %1599  ;;  %660 = vadd.xlane.f32.xlu0 %v659_v33  ;;  %v658_v38 = vmul.f32 %v1598_v34, %v654_v21 }
 0x139   :  { %689 = vadd.xlane.f32.xlu1 %v688_v35  ;;  %v687_v40 = vmul.f32 %v1600_v36, %v683_v24 }
 0x13a   :  { %v662_v41 = vadd.f32 %v658_v38, %v657_v37  ;;  %v893_v37 = vld [vmem:[%s2222_s8 + $0x38] sm:$0xff] }
 0x13b   :  { %v691_v42 = vadd.f32 %v687_v40, %v686_v39  ;;  %1480 = vmatpush3.msra.mxu0 %v893_v37  ;;  %1499 = vmatpush3.msra.mxu1 %v893_v37  ;;  %v892_v40 = vld [vmem:[%s2222_s8 + $0x30] sm:$0xff]  ;;  %v1053_v37 = vld [vmem:[%s2223_s9 + $0x18] sm:$0xff] }
 0x13c   :  { %663 = vadd.xlane.f32.xlu0 %v662_v41  ;;  %1481 = vmatprep.subr.mxu0 %v1756_v0  ;;  %v891_v41 = vld [vmem:[%s2222_s8 + $0x28] sm:$0xff] }
 0x13d   :  { %692 = vadd.xlane.f32.xlu1 %v691_v42  ;;  %1500 = vmatprep.subr.mxu1 %v1756_v0  ;;  %v890_v42 = vld [vmem:[%s2222_s8 + $0x20] sm:$0xff] }
 0x13e   :  { %1482 = vmatpush3.msra.mxu0 %v892_v40  ;;  %1501 = vmatpush3.msra.mxu1 %v892_v40 }
 0x13f   :  { %1483 = vmatprep.subr.mxu0 %v1756_v0  ;;  %1502 = vmatprep.subr.mxu1 %v1756_v0 }
 0x140   :  { %1484 = vmatpush3.msra.mxu0 %v891_v41  ;;  %1503 = vmatpush3.msra.mxu1 %v891_v41 }
 0x141   :  { %1485 = vmatprep.subr.mxu0 %v1756_v0  ;;  %1504 = vmatprep.subr.mxu1 %v1756_v0 }
 0x142   :  { %1486 = vmatpush3.msra.mxu0 %v890_v42  ;;  %1505 = vmatpush3.msra.mxu1 %v890_v42  ;;  %v1051_v42 = vld [vmem:[%s2223_s9 + $0x8] sm:$0xff] }
 0x143   :  { %1487 = vmatprep.subr.mxu0 %v1756_v0  ;;  %1506 = vmatprep.subr.mxu1 %v1756_v0 }
 0x1c1   :  { %v661_v45 = vpop.xlane.xlu0 %660 }
 0x1c2   :  { %v690_v47 = vpop.xlane.xlu1 %689  ;;  %v701_v49 = vrot.slane %v661_v45, %v700_v46 }
 0x1c3   :  { %v770_v52 = vrot.slane %v690_v47, %v700_v46 }
 0x1c5   :  { %v664_v48 = vpop.xlane.xlu0 %663 }
 0x1c6   :  { %v693_v50 = vpop.xlane.xlu1 %692  ;;  %v705_v51 = vrot.slane %v664_v48, %v700_v46 }
 0x1c7   :  { %v774_v53 = vrot.slane %v693_v50, %v700_v46 }
 0x1c8   :  { %v707_v54 = vsel %vm706_vm1, %v705_v51, %v701_v49  ;;  %v886_v51 = vld [vmem:[%s2222_s8] sm:$0xff] }
 0x1c9   :  { %v775_v55 = vsel %vm706_vm1, %v774_v53, %v770_v52  ;;  %v710_v7 = vsel %vm709_vm2, %v707_v54, -inf  ;;  %v1377_v52 = vadd.s32 4294967232, %v2023_v44 }
 0x1ca   :  { %v777_v56 = vsel %vm709_vm2, %v775_v55, -inf  ;;  %711 = vmax.xlane.f32.xlu0 %v710_v7 }
 0x1cb   :  { %778 = vmax.xlane.f32.xlu1 %v777_v56  ;;  %v1380_v53 = vsub.s32 %v1377_v52, %v1978_v8  ;;  %v1292_v52 = vld [vmem:[%s2225_s11 + $0x48] sm:$0xff] }
 0x253   :  { %v712_v58 = vpop.xlane.xlu0 %711 }
 0x254   :  { %v779_v59 = vpop.xlane.xlu1 %778  ;;  %v717_v60 = vrot.slane %v712_v58, %v1981_v9  ;;  %v721_v61 = vrot.slane %v712_v58, %v2003_v43 }
 0x255   :  { %v784_v62 = vrot.slane %v779_v59, %v1981_v9  ;;  %v788_v11 = vrot.slane %v779_v59, %v2003_v43 }
 0x256   :  { %v724_v63 = vsub.f32 %v661_v45, %v717_v60  ;;  %v725_v1 = vsub.f32 %v664_v48, %v721_v61 }
 0x257   :  { %v791_v12 = vsub.f32 %v690_v47, %v784_v62  ;;  %v792_v14 = vsub.f32 %v693_v50, %v788_v11  ;;  %v889_v47 = vld [vmem:[%s2222_s8 + $0x18] sm:$0xff]  ;;  %v888_v50 = vld [vmem:[%s2222_s8 + $0x10] sm:$0xff] }
 0x258   :  { %v726_v2 = vmul.f32 1.442695, %v724_v63  ;;  %v728_v13 = vmul.f32 1.442695, %v725_v1  ;;  %1488 = vmatpush3.msra.mxu0 %v889_v47  ;;  %1507 = vmatpush3.msra.mxu1 %v889_v47  ;;  %v1388_v1 = vadd.s32 4294967224, %v2023_v44 }
 0x259   :  { %v793_v15 = vmul.f32 1.442695, %v791_v12  ;;  %v795_v16 = vmul.f32 1.442695, %v792_v14  ;;  %1489 = vmatprep.subr.mxu0 %v1756_v0  ;;  %1508 = vmatprep.subr.mxu1 %v1756_v0  ;;  %v116_v47 = vld [vmem:[#allocation7] sm:$0x3] }
 0x25a   :  { %1601 = vpow2.f32 %v726_v2  ;;  %1490 = vmatpush3.msra.mxu0 %v888_v50  ;;  %1509 = vmatpush3.msra.mxu1 %v888_v50  ;;  %v1391_v14 = vsub.s32 %v1388_v1, %v1978_v8  ;;  %v1141_v50 = vld [vmem:[%s2225_s11 + $0x28] sm:$0xff] }
 0x25b   :  { %1603 = vpow2.f32 %v728_v13  ;;  %1491 = vmatprep.subr.mxu0 %v1756_v0  ;;  %1510 = vmatprep.subr.mxu1 %v1756_v0 }
 0x25c   :  { %1605 = vpow2.f32 %v793_v15 }
 0x25d   :  { %1607 = vpow2.f32 %v795_v16 }
 0x267   :  { %v1602_v17 = vpop.eup %1601 }
 0x268   :  { %733 = vperm.xlu0 %1583, %v1602_v17   ;;  %v1604_v18 = vpop.eup %1603 }
 0x269   :  { %736 = vperm.xlu1 %1584, %v1604_v18   ;;  %v1606_v19 = vpop.eup %1605 }
 0x26a   :  { %v1608_v20 = vpop.eup %1607 }
 0x26d   :  { %800 = vperm.xlu1 %1584, %v1606_v19  }
 0x271   :  { %803 = vperm.xlu1 %1584, %v1608_v20  }
 0x2e3   :  { %v734_v21 = vpop.permute.xlu0 %733 }
 0x2e4   :  { %v741_v22 = vrot.slane %v734_v21, %v700_v46  ;;  %v737_v23 = vpop.permute.xlu1 %736 }
 0x2e5   :  { %v745_v24 = vrot.slane %v737_v23, %v700_v46 }
 0x2e7   :  { %v746_v25 = vsel %vm706_vm1, %v745_v24, %v741_v22 }
 0x2e8   :  { %v801_v26 = vpop.permute.xlu1 %800  ;;  %v748_v27 = vsel %vm709_vm2, %v746_v25, 0.0 }
 0x2e9   :  { %749 = vadd.xlane.f32.xlu1 %v748_v27  ;;  %v808_v29 = vrot.slane %v801_v26, %v700_v46 }
 0x2ec   :  { %v804_v28 = vpop.permute.xlu1 %803 }
 0x2ed   :  { %v812_v30 = vrot.slane %v804_v28, %v700_v46 }
 0x2ef   :  { %v813_v31 = vsel %vm706_vm1, %v812_v30, %v808_v29 }
 0x2f0   :  { %v815_v10 = vsel %vm709_vm2, %v813_v31, 0.0 }
 0x2f1   :  { %816 = vadd.xlane.f32.xlu0 %v815_v10 }
 0x372   :  { %v750_v32 = vpop.xlane.xlu1 %749 }
 0x373   :  { %1609 = vrcp.f32 %v750_v32  ;;  %v1055_v32 = vld [vmem:[%s2223_s9 + $0x28] sm:$0xff] }
 0x37a   :  { %v817_v33 = vpop.xlane.xlu0 %816 }
 0x37b   :  { %1611 = vrcp.f32 %v817_v33 }
 0x380   :  { %v1610_v34 = vpop.eup %1609 }
 0x381   :  { %v760_v35 = vrot.slane %v1610_v34, %v2003_v43  ;;  %v756_v36 = vrot.slane %v1610_v34, %v1981_v9  ;;  %v1054_v34 = vld [vmem:[%s2223_s9 + $0x20] sm:$0xff] }
 0x383   :  { %v764_v38 = vmul.f32 %v1604_v18, %v760_v35  ;;  %v763_v39 = vmul.f32 %v1602_v17, %v756_v36 }
 0x385   :  { %839 = vperm.xlu0 %1583, %v764_v38   ;;  %834 = vperm.xlu1 %1584, %v763_v39   ;;  %v1052_v39 = vld [vmem:[%s2223_s9 + $0x10] sm:$0xff] }
 0x388   :  { %v1612_v45 = vpop.eup %1611 }
 0x389   :  { %v823_v46 = vrot.slane %v1612_v45, %v1981_v9  ;;  %v827_v49 = vrot.slane %v1612_v45, %v2003_v43  ;;  %v887_v9 = vld [vmem:[%s2222_s8 + $0x8] sm:$0xff] }
 0x38a   :  { %1492 = vmatpush3.msra.mxu0 %v887_v9  ;;  %1511 = vmatpush3.msra.mxu1 %v887_v9  ;;  %v1140_v9 = vld [vmem:[%s2225_s11 + $0x20] sm:$0xff] }
 0x38b   :  { %v830_v48 = vmul.f32 %v1606_v19, %v823_v46  ;;  %v831_v43 = vmul.f32 %v1608_v20, %v827_v49  ;;  %1493 = vmatprep.subr.mxu0 %v1756_v0  ;;  %1512 = vmatprep.subr.mxu1 %v1756_v0  ;;  %v1050_v46 = vld [vmem:[%s2223_s9] sm:$0xff]  ;;  %v1142_v49 = vld [vmem:[%s2225_s11 + $0x30] sm:$0xff] }
 0x38c   :  { %1494 = vmatpush3.msra.mxu0 %v886_v51  ;;  %1513 = vmatpush3.msra.mxu1 %v886_v51  ;;  %v1293_v51 = vld [vmem:[%s2225_s11 + $0x50] sm:$0xff] }
 0x38d   :  { %860 = vperm.xlu1 %1584, %v830_v48   ;;  %1517 = vmatprep.subr.mxu0 %v1756_v0  ;;  %v1143_v48 = vld [vmem:[%s2225_s11 + $0x38] sm:$0xff] }
 0x38e   :  { %1536 = vmatprep.subr.mxu1 %v1756_v0 }
 0x391   :  { %865 = vperm.xlu1 %1584, %v831_v43   ;;  %v1294_v43 = vld [vmem:[%s2225_s11 + $0x58] sm:$0xff] }
 0x400   :  { %v835_v54 = vpop.permute.xlu1 %834  ;;  %v840_v55 = vpop.permute.xlu0 %839 }
 0x401   :  { %v842_v7 = vmul.f32 %v835_v54, %v1955_v3  ;;  %v1381_v56 = vrot.slane %v835_v54, %v1380_v53  ;;  %v843_v57 = vmul.f32 %v840_v55, %v1967_v5  ;;  %v1385_v58 = vrot.slane %v840_v55, %v1380_v53  ;;  %v1291_v53 = vld [vmem:[%s2225_s11 + $0x40] sm:$0xff] }
 0x403   :  { %v844_v59 = vsel %vm187_vm0, %v842_v7, 0.0  ;;  %v851_v60 = vsel %vm187_vm0, %v843_v57, 0.0  ;;  %v2094_v61 = vsel %vm706_vm1, %v1385_v58, %v1381_v56  ;;  %v1428_v7 = vld [vmem:[%s2224_s10] ss:$0 sm:$0xff] }
 0x404   :  { %v845_v62 = vrot.slane %v844_v59, 4  ;;  %v852_v63 = vrot.slane %v851_v60, 4 }
 0x406   :  { %v846_v2 = vadd.f32 %v845_v62, %v844_v59  ;;  %v853_v11 = vadd.f32 %v852_v63, %v851_v60  ;;  %v1431_v59 = vld [vmem:[%s2224_s10 + $0x1] ss:$0 sm:$0xff] }
 0x408   :  { %v847_v12 = vrot.slane %v846_v2, 2  ;;  %v854_v13 = vrot.slane %v853_v11, 2  ;;  %v861_v3 = vpop.permute.xlu1 %860 }
 0x409   :  { %v868_v5 = vmul.f32 %v861_v3, %v1957_v4  ;;  %v1392_v22 = vrot.slane %v861_v3, %v1391_v14  ;;  %v1057_v4 = vld [vmem:[%s2223_s9 + $0x38] sm:$0xff] }
 0x40a   :  { %v848_v15 = vadd.f32 %v847_v12, %v846_v2  ;;  %v855_v16 = vadd.f32 %v854_v13, %v853_v11  ;;  %v1139_v2 = vld [vmem:[%s2225_s11 + $0x18] sm:$0xff]  ;;  %v1138_v12 = vld [vmem:[%s2225_s11 + $0x10] sm:$0xff]  ;;  %v1137_v13 = vld [vmem:[%s2225_s11 + $0x8] sm:$0xff] }
 0x40b   :  { %v870_v17 = vsel %vm187_vm0, %v868_v5, 0.0 }
 0x40c   :  { %v849_v18 = vrot.slane %v848_v15, 1  ;;  %v856_v19 = vrot.slane %v855_v16, 1  ;;  %v871_v20 = vrot.slane %v870_v17, 4  ;;  %v866_v21 = vpop.permute.xlu1 %865 }
 0x40d   :  { %v869_v44 = vmul.f32 %v866_v21, %v1969_v6  ;;  %v1396_v23 = vrot.slane %v866_v21, %v1391_v14  ;;  %v1056_v6 = vld [vmem:[%s2223_s9 + $0x30] sm:$0xff]  ;;  %v1136_v14 = vld [vmem:[%s2225_s11] sm:$0xff]  ;;  %s1760_s11 = smov [#allocation11]  }
 0x40e   :  { %v850_v24 = vadd.f32 %v849_v18, %v848_v15  ;;  %v857_v25 = vadd.f32 %v856_v19, %v855_v16  ;;  %v872_v26 = vadd.f32 %v871_v20, %v870_v17  ;;  %v1436_v21 = vld [vmem:[%s2226_s12] ss:$0 sm:$0xff]  ;;  %s1411_s9 = sshll.u32 %s1760_s11, 4  ;;  %s1412_s9 = int_to_ptr.vmem [resolvable:$true] %s1411_s9 }
 0x40f   :  { %v877_v27 = vsel %vm187_vm0, %v869_v44, 0.0  ;;  %v2103_v8 = vsel %vm706_vm1, %v1396_v23, %v1392_v22  ;;  %s1719_s22 = scalar_lea.vmem %s1412_s9, 32  ;;  %p1724_p12 = scmp.lt.s32.totalorder %s1412_s9, %s1412_s9 }
 0x410   :  { %v873_v28 = vrot.slane %v872_v26, 2  ;;  %v878_v29 = vrot.slane %v877_v27, 4  ;;  %v900_v30 = vsel %vm706_vm1, %v857_v25, %v850_v24  ;;  %p1720_p11 = scmp.ne.s32.totalorder %s1412_s9, %s1719_s22  ;;  %p1725_p13 = scmp.lt.s32.totalorder %s1719_s22, %s1719_s22 }
 0x411   :  { %1496 = vmatmul.mubr.msk.f32.vlgmr.msra.gmra.mxu0 %vm187_vm0, %v900_v30 }
 0x412   :  { %v874_v31 = vadd.f32 %v873_v28, %v872_v26  ;;  %v879_v10 = vadd.f32 %v878_v29, %v877_v27  ;;  %1518 = vmatpush3.msra.mxu0 %v1057_v4  ;;  %1533 = vmatprep.mubr.msk.f32.mxu0 %vm1759_vm3, %v1756_v0  ;;  %p1726_p0 = por %p1725_p13, %p1724_p12 }
 0x413   :  { %1519 = vmatprep.subr.mxu0 %v1756_v0 }
 0x414   :  { %v880_v33 = vrot.slane %v879_v10, 2  ;;  %1520 = vmatpush3.msra.mxu0 %v1056_v6  ;;  %v875_v35 = vrot.slane %v874_v31, 1  ;;  %p1727_p1 = pnand %p1726_p0, %p1720_p11 }
 0x415   :  { %1521 = vmatprep.subr.mxu0 %v1756_v0 }
 0x416   :  { %v881_v36 = vadd.f32 %v880_v33, %v879_v10  ;;  %1522 = vmatpush3.msra.mxu0 %v1055_v32  ;;  %v876_v40 = vadd.f32 %v875_v35, %v874_v31 }
 0x417   :  { %1523 = vmatprep.subr.mxu0 %v1756_v0 }
 0x418   :  { %v882_v38 = vrot.slane %v881_v36, 1  ;;  %1524 = vmatpush3.msra.mxu0 %v1054_v34 }
 0x419   :  { %1525 = vmatprep.subr.mxu0 %v1756_v0 }
 0x41a   :  { %v883_v41 = vadd.f32 %v882_v38, %v881_v36  ;;  %1526 = vmatpush3.msra.mxu0 %v1053_v37 }
 0x41b   :  { %1527 = vmatprep.subr.mxu0 %v1756_v0 }
 0x41c   :  { %v976_v45 = vsel %vm706_vm1, %v883_v41, %v876_v40  ;;  %1528 = vmatpush3.msra.mxu0 %v1052_v39 }
 0x41d   :  { %1515 = vmatmul.mubr.msk.f32.vlgmr.msra.gmra.mxu1 %vm187_vm0, %v976_v45  ;;  %1529 = vmatprep.subr.mxu0 %v1756_v0 }
 0x41e   :  { %1530 = vmatpush3.msra.mxu0 %v1051_v42  ;;  %1544 = vmatprep.mubr.msk.f32.mxu1 %vm1759_vm3, %v1756_v0 }
 0x41f   :  { %1531 = vmatprep.subr.mxu0 %v1756_v0  ;;  %1537 = vmatpush3.msra.mxu1 %v1143_v48 }
 0x420   :  { %1532 = vmatpush3.msra.mxu0 %v1050_v46  ;;  %1538 = vmatprep.subr.mxu1 %v1756_v0 }
 0x421   :  { %1534 = vmatmul.mubr.msk.f32.vlgmr.msra.gmra.mxu0 %vm187_vm0, %v116_v47  ;;  %1558 = vmatprep.subr.mxu0 %v1756_v0 }
 0x422   :  { %1566 = vmatprep.mubr.msk.f32.mxu0 %vm1759_vm3, %v1756_v0  ;;  %1539 = vmatpush3.msra.mxu1 %v1142_v49 }
 0x423   :  { %1540 = vmatprep.subr.mxu1 %v1756_v0  ;;  %1559 = vmatpush3.msra.mxu0 %v1294_v43 }
 0x424   :  { %1541 = vmatpush3.msra.mxu1 %v1141_v50  ;;  %1560 = vmatprep.subr.mxu0 %v1756_v0 }
 0x425   :  { %1542 = vmatprep.subr.mxu1 %v1756_v0  ;;  %1561 = vmatpush3.msra.mxu0 %v1293_v51 }
 0x426   :  { %1543 = vmatpush3.msra.mxu1 %v1140_v9  ;;  %1562 = vmatprep.subr.mxu0 %v1756_v0 }
 0x427   :  { %1547 = vmatprep.subr.mxu1 %v1756_v0  ;;  %1563 = vmatpush3.msra.mxu0 %v1292_v52 }
 0x428   :  { %1564 = vmatprep.subr.mxu0 %v1756_v0 }
 0x429   :  { %1565 = vmatpush3.msra.mxu0 %v1291_v53 }
 0x4d1   :  { %v969_v54 = vpop.f32.mrf.mxu0 }
 0x4d2   :  { %v970_v1 = vadd.f32 %v1428_v7, %v969_v54 }
 0x4d3   :  { %v1497_v55 = vpop.f32.mrf.mxu0 }
 0x4dd   :  { %v1045_v56 = vpop.f32.mrf.mxu1 }
 0x4de   :  { %v1046_v57 = vadd.f32 %v1428_v7, %v1045_v56 }
 0x4df   :  { %v1516_v58 = vpop.f32.mrf.mxu1 }
 0x4e0   :  { %1613 = vtanh.f32 %v1046_v57 }
 0x4e1   :  { %v1131_v60 = vpop.f32.mrf.mxu0 }
 0x4e2   :  { %v1132_v62 = vadd.f32 %v1431_v59, %v1131_v60 }
 0x4e3   :  { %v1535_v63 = vpop.f32.mrf.mxu0 }
 0x4e4   :  { %1615 = vtanh.f32 %v1132_v62 }
 0x4e5   :  { %1617 = vtanh.f32 %v970_v1 }
 0x4ed   :  { %v1614_v11 = vpop.eup %1613 }
 0x4ee   :  { %1545 = vmatmul.mubr.msk.f32.vlgmr.msra.gmra.mxu1 %vm1144_vm4, %v1614_v11 }
 0x4ef   :  { %1548 = vmatpush3.msra.mxu1 %v1139_v2  ;;  %1555 = vmatprep.mubr.msk.f32.mxu1 %vm1759_vm3, %v1756_v0 }
 0x4f0   :  { %1549 = vmatprep.subr.mxu1 %v1756_v0 }
 0x4f1   :  { %v1616_v3 = vpop.eup %1615  ;;  %1550 = vmatpush3.msra.mxu1 %v1138_v12 }
 0x4f2   :  { %1551 = vmatprep.subr.mxu1 %v1756_v0  ;;  %1567 = vmatmul.mubr.msk.f32.vlgmr.msra.gmra.mxu0 %vm1144_vm4, %v1616_v3  ;;  %v1618_v5 = vpop.eup %1617 }
 0x4f3   :  { %1552 = vmatpush3.msra.mxu1 %v1137_v13 }
 0x4f4   :  { %1553 = vmatprep.subr.mxu1 %v1756_v0 }
 0x4f5   :  { %1554 = vmatpush3.msra.mxu1 %v1136_v14 }
 0x4f6   :  { %1556 = vmatmul.mubr.msk.f32.vlgmr.msra.gmra.mxu1 %vm1144_vm4, %v1618_v5 }
 0x5ae   :  { %v1214_v15 = vpop.f32.mrf.mxu1 }
 0x5b0   :  { %v1546_v16 = vpop.f32.mrf.mxu1 }
 0x5b2   :  { %v1364_v17 = vpop.f32.mrf.mxu0 }
 0x5b4   :  { %v1568_v18 = vpop.f32.mrf.mxu0 }
 0x5b6   :  { %v1287_v19 = vpop.f32.mrf.mxu1 }
 0x5b7   :  { %v1288_v20 = vadd.f32 %v1287_v19, %v1214_v15 }
 0x5b8   :  { %v1557_v22 = vpop.f32.mrf.mxu1 }
 0x5b9   :  { %v1368_v44 = vadd.f32 %v1364_v17, %v1288_v20 }
 0x5bb   :  { %v1376_v23 = vadd.f32 %v1436_v21, %v1368_v44 }
 0x5bd   :  { %v1399_v0 = vsel %vm187_vm0, %v1376_v23, %v2094_v61 }
 0x5be   :  { %v1401_v24 = vsel %vm1400_vm5, %v1399_v0, %v2103_v8 }
 0x5bf   :  { %v1403_v25 = vsel %vm1402_vm6, %v1401_v24, 0.0 }
 0x5c0   :  { %1404 = vst [vmem:[#allocation11] sm:$0x3] %v1403_v25 }
 0x5c1   :  { %1730 = shalt.err (!%p1727_p1)
}
 0x5c2   :  { %1414 = dma.vmem_to_hbm [thread:$0]  %s1412_s9, 32, %s2227_s13, [#allocation4]  }
 0x5c3   :  { %1745 = dma.done.wait [#allocation4], 32  }
 0x5c4   :  { %1746 = vsyncadd [#allocation4], 4294967264 }
 0x5c5   :  { %1418 = vsyncpa [#allocation3], 1 }
 0x5c6   :  { %1419 = vsyncpa [#allocation6], 1 }
 0x5c7   :  { %1420 = vsyncpa [#allocation9], 1 }
 0x5c8   :  { %1421 = vsyncpa [#allocation4], 1 }

</bundles_post_ra>
